<compile_context>
chip_gen: v5e
topology: v5e:2x2
jax: 0.10.0
libtpu: 0.0.40
codegen_flags: <defaults>
</compile_context>

<pallas_src>
import functools

import jax
import jax.numpy as jnp
from jax import lax
from jax.experimental import pallas as pl
from jax.experimental.pallas import tpu as pltpu


def mlp_kernel(ids_ref, wf_ref, b1_ref, w2_ref, b2_ref, w3_ref, b3_ref,
               out_ref, *, act_bf16):
    ids = ids_ref[...]                        # (TB, L) int32
    TB, L = ids.shape
    V = wf_ref.shape[0]                       # vocab_size + 1

    # --- fused embedding-mean + Linear1 -------------------------------------
    #   mean_l emb[ids[b,l]] @ W1  ==  counts[b,:] @ ((emb @ W1) / L)
    # Single (1, V) iota vreg; broadcasting in the compare expands it.
    vocab_iota = lax.broadcasted_iota(jnp.int32, (1, V), 1)
    counts = jnp.zeros((TB, V), jnp.float32)
    for l in range(L):                                        # static unroll, L small
        counts = counts + (ids[:, l:l + 1] == vocab_iota).astype(jnp.float32)

    # counts are integers <= L (exact in bf16 for L <= 256); bf16 x bf16 -> f32 MXU.
    h1 = jnp.dot(counts.astype(jnp.bfloat16), wf_ref[...],
                 preferred_element_type=jnp.float32) + b1_ref[...]

    # --- ReLU -> tanh --------------------------------------------------------
    if act_bf16:      # v6e/v7x: bf16 VPU + bf16 EUP -> half the tanh / spill cost
        h1 = jnp.tanh(jnp.maximum(h1.astype(jnp.bfloat16), 0.0))
    else:             # v5e: no bf16 VPU/EUP -> keep activation math in f32
        h1 = jnp.tanh(jnp.maximum(h1, 0.0)).astype(jnp.bfloat16)

    # --- Linear(256, 64) -> tanh -> ReLU ------------------------------------
    h2 = jnp.dot(h1, w2_ref[...], preferred_element_type=jnp.float32) + b2_ref[...]
    if act_bf16:
        h2 = jnp.maximum(jnp.tanh(h2.astype(jnp.bfloat16)), 0.0)
    else:
        h2 = jnp.maximum(jnp.tanh(h2), 0.0).astype(jnp.bfloat16)

    # --- Linear(64, num_classes), lane-padded to 128 -------------------------
    out = jnp.dot(h2, w3_ref[...], preferred_element_type=jnp.float32) + b3_ref[...]
    out_ref[...] = out.astype(out_ref.dtype)      # bf16 lane-dense store


def _device_kind():
    try:
        return jax.devices()[0].device_kind.lower()
    except Exception:
        return ""


def _use_bf16_activations(kind):
    # bf16 VPU/EUP exist on v6e and later; v5e and older keep f32 activations.
    return not any(g in kind for g in ("v2", "v3", "v4", "v5"))


def _round_up(x, m):
    return ((x + m - 1) // m) * m


def _select_batch_tile(B, kind):
    old_gen = any(g in kind for g in ("v2", "v3", "v4", "v5"))
    tb = 256 if old_gen else 512                  # amortize per-grid-step overhead
    if "v7" in kind and B >= 16:
        # v7x: 2 TensorCores per chip -- keep the grid at >= 2 steps.
        tb = min(tb, _round_up(pl.cdiv(B, 2), 8))
    if B <= tb:
        return B                                  # single full-extent block
    return tb                                     # multiple of 8 by construction


def mlp_forward(ids, emb, w1, b1, w2, b2, w3, b3, *, batch_tile=None):
    ids = ids.astype(jnp.int32)
    B, L = ids.shape
    V, D = emb.shape
    H1 = w1.shape[1]
    H2 = w2.shape[1]
    C = w3.shape[1]

    # Fuse embedding-mean with Linear1 (no nonlinearity in between):
    #   W_fused = (emb @ W1) / L, shape (V, H1), bf16.
    wf = (jnp.dot(emb.astype(jnp.float32), w1.astype(jnp.float32)) * (1.0 / L))
    wf = wf.astype(jnp.bfloat16)

    # Lane-dense output: pad num_classes to a multiple of 128 (unmasked vst);
    # stored as bf16 to halve the padded writeback; sliced + upcast afterwards.
    C_pad = max(128, pl.cdiv(C, 128) * 128)
    if C_pad != C:
        w3 = jnp.pad(w3, ((0, 0), (0, C_pad - C)))
        b3 = jnp.pad(b3, ((0, 0), (0, C_pad - C)))

    kind = _device_kind()
    act_bf16 = _use_bf16_activations(kind)
    TB = batch_tile if batch_tile is not None else _select_batch_tile(B, kind)
    grid = (pl.cdiv(B, TB),)

    # Weights/biases: constant index maps -> DMA'd once, VMEM-resident across
    # batch tiles; only the ids / out tiles stream.
    def res(shape):
        return pl.BlockSpec(shape, lambda i: (0, 0))

    cost = pl.CostEstimate(
        flops=2 * B * (V * H1 + H1 * H2 + H2 * C_pad),
        transcendentals=B * (H1 + H2),
        bytes_accessed=(ids.size * 4 + wf.size * 2 + b1.size * 4 +
                        w2.size * 2 + b2.size * 4 + w3.size * 2 + b3.size * 4 +
                        B * C_pad * 2),
    )

    out = pl.pallas_call(
        functools.partial(mlp_kernel, act_bf16=act_bf16),
        out_shape=jax.ShapeDtypeStruct((B, C_pad), jnp.bfloat16),
        grid_spec=pltpu.PrefetchScalarGridSpec(
            num_scalar_prefetch=0,
            grid=grid,
            in_specs=[
                pl.BlockSpec((TB, L), lambda i: (i, 0)),   # ids tile (streams)
                res((V, H1)),                              # fused emb@W1 (bf16)
                res((1, H1)),                              # b1 (f32)
                res((H1, H2)), res((1, H2)),               # hidden2
                res((H2, C_pad)), res((1, C_pad)),         # output (lane-padded)
            ],
            out_specs=pl.BlockSpec((TB, C_pad), lambda i: (i, 0)),
        ),
        compiler_params=pltpu.CompilerParams(
            dimension_semantics=("parallel",)),
        cost_estimate=cost,
    )(ids, wf, b1, w2, b2, w3, b3)

    return out[:, :C].astype(jnp.float32)


def init_params(key, num_classes, vocab_size):
    ks = jax.random.split(key, 7)
    # bf16 table/weights (MXU fast path), f32 biases; weights stored (in, out)
    # i.e. the transpose of nn.Linear.weight.
    emb = jax.random.normal(ks[0], (vocab_size + 1, 128), jnp.float32).astype(jnp.bfloat16)
    w1 = (jax.random.normal(ks[1], (128, 256), jnp.float32) * 0.05).astype(jnp.bfloat16)
    b1 = jax.random.normal(ks[2], (1, 256), jnp.float32) * 0.05
    w2 = (jax.random.normal(ks[3], (256, 64), jnp.float32) * 0.05).astype(jnp.bfloat16)
    b2 = jax.random.normal(ks[4], (1, 64), jnp.float32) * 0.05
    w3 = (jax.random.normal(ks[5], (64, num_classes), jnp.float32) * 0.05).astype(jnp.bfloat16)
    b3 = jax.random.normal(ks[6], (1, num_classes), jnp.float32) * 0.05
    return emb, w1, b1, w2, b2, w3, b3


def reference_forward(ids, emb, w1, b1, w2, b2, w3, b3):
    # Plain-JAX f32 reference of the original module semantics.
    y = jnp.mean(emb[ids].astype(jnp.float32), axis=1)
    h1 = jnp.dot(y, w1.astype(jnp.float32)) + b1
    h1 = jnp.tanh(jnp.maximum(h1, 0.0))
    h2 = jnp.dot(h1, w2.astype(jnp.float32)) + b2
    h2 = jnp.maximum(jnp.tanh(h2), 0.0)
    return jnp.dot(h2, w3.astype(jnp.float32)) + b3


if __name__ == "__main__":
    num_classes = 4
    vocab_size = 32
    B, L = 2, 8

    key = jax.random.PRNGKey(0)
    k_ids, k_params = jax.random.split(key)
    ids = jax.random.randint(k_ids, (B, L), 0, vocab_size + 1, dtype=jnp.int32)
    params = init_params(k_params, num_classes, vocab_size)

    out = mlp_forward(ids, *params)
    out = jax.block_until_ready(out)

    ref = reference_forward(ids, *params)
    assert out.shape == (B, num_classes)
    assert jnp.allclose(out, ref, atol=2e-2, rtol=2e-2)

    print("KERNEL_OK")
</pallas_src>

<mosaic_0001>
module attributes {stable_mosaic.version = 11 : i64} {
  func.func @mlp_kernel(%arg0: i32, %arg1: memref<2x8xi32, #tpu.memory_space<vmem>>, %arg2: memref<33x256xbf16, #tpu.memory_space<vmem>>, %arg3: memref<1x256xf32, #tpu.memory_space<vmem>>, %arg4: memref<256x64xbf16, #tpu.memory_space<vmem>>, %arg5: memref<1x64xf32, #tpu.memory_space<vmem>>, %arg6: memref<64x128xbf16, #tpu.memory_space<vmem>>, %arg7: memref<1x128xf32, #tpu.memory_space<vmem>>, %arg8: memref<2x128xbf16, #tpu.memory_space<vmem>>) attributes {dimension_semantics = [#tpu.dimension_semantics<parallel>], iteration_bounds = array<i64: 1>, scalar_prefetch = 0 : i64, scratch_operands = 0 : i64, tpu.core_type = #tpu.core_type<tc>, window_params = [{transform_indices = @transform_0, window_bounds = array<i64: 2, 8>}, {pipeline_mode = #tpu.pipeline_mode<synchronous>, transform_indices = @transform_1, window_bounds = array<i64: 33, 256>}, {pipeline_mode = #tpu.pipeline_mode<synchronous>, transform_indices = @transform_2, window_bounds = array<i64: 1, 256>}, {pipeline_mode = #tpu.pipeline_mode<synchronous>, transform_indices = @transform_3, window_bounds = array<i64: 256, 64>}, {pipeline_mode = #tpu.pipeline_mode<synchronous>, transform_indices = @transform_4, window_bounds = array<i64: 1, 64>}, {pipeline_mode = #tpu.pipeline_mode<synchronous>, transform_indices = @transform_5, window_bounds = array<i64: 64, 128>}, {pipeline_mode = #tpu.pipeline_mode<synchronous>, transform_indices = @transform_6, window_bounds = array<i64: 1, 128>}, {transform_indices = @transform_7, window_bounds = array<i64: 2, 128>}]} {
    %c0 = arith.constant 0 : index
    %c0_0 = arith.constant 0 : index
    %0 = vector.load %arg1[%c0, %c0_0] : memref<2x8xi32, #tpu.memory_space<vmem>>, vector<2x8xi32>
    %1 = tpu.iota {dimensions = array<i32: 1>} : vector<1x33xi32>
    %cst = arith.constant 0.000000e+00 : f32
    %2 = vector.broadcast %cst : f32 to vector<2x33xf32>
    %3 = vector.extract_strided_slice %0 {offsets = [0, 0], sizes = [2, 1], strides = [1, 1]} : vector<2x8xi32> to vector<2x1xi32>
    %4 = vector.broadcast %3 : vector<2x1xi32> to vector<2x33xi32>
    %5 = vector.broadcast %1 : vector<1x33xi32> to vector<2x33xi32>
    %6 = arith.cmpi eq, %4, %5 : vector<2x33xi32>
    %7 = arith.extui %6 : vector<2x33xi1> to vector<2x33xi32>
    %8 = arith.sitofp %7 : vector<2x33xi32> to vector<2x33xf32>
    %9 = arith.addf %2, %8 : vector<2x33xf32>
    %10 = vector.extract_strided_slice %0 {offsets = [0, 1], sizes = [2, 1], strides = [1, 1]} : vector<2x8xi32> to vector<2x1xi32>
    %11 = vector.broadcast %10 : vector<2x1xi32> to vector<2x33xi32>
    %12 = vector.broadcast %1 : vector<1x33xi32> to vector<2x33xi32>
    %13 = arith.cmpi eq, %11, %12 : vector<2x33xi32>
    %14 = arith.extui %13 : vector<2x33xi1> to vector<2x33xi32>
    %15 = arith.sitofp %14 : vector<2x33xi32> to vector<2x33xf32>
    %16 = arith.addf %9, %15 : vector<2x33xf32>
    %17 = vector.extract_strided_slice %0 {offsets = [0, 2], sizes = [2, 1], strides = [1, 1]} : vector<2x8xi32> to vector<2x1xi32>
    %18 = vector.broadcast %17 : vector<2x1xi32> to vector<2x33xi32>
    %19 = vector.broadcast %1 : vector<1x33xi32> to vector<2x33xi32>
    %20 = arith.cmpi eq, %18, %19 : vector<2x33xi32>
    %21 = arith.extui %20 : vector<2x33xi1> to vector<2x33xi32>
    %22 = arith.sitofp %21 : vector<2x33xi32> to vector<2x33xf32>
    %23 = arith.addf %16, %22 : vector<2x33xf32>
    %24 = vector.extract_strided_slice %0 {offsets = [0, 3], sizes = [2, 1], strides = [1, 1]} : vector<2x8xi32> to vector<2x1xi32>
    %25 = vector.broadcast %24 : vector<2x1xi32> to vector<2x33xi32>
    %26 = vector.broadcast %1 : vector<1x33xi32> to vector<2x33xi32>
    %27 = arith.cmpi eq, %25, %26 : vector<2x33xi32>
    %28 = arith.extui %27 : vector<2x33xi1> to vector<2x33xi32>
    %29 = arith.sitofp %28 : vector<2x33xi32> to vector<2x33xf32>
    %30 = arith.addf %23, %29 : vector<2x33xf32>
    %31 = vector.extract_strided_slice %0 {offsets = [0, 4], sizes = [2, 1], strides = [1, 1]} : vector<2x8xi32> to vector<2x1xi32>
    %32 = vector.broadcast %31 : vector<2x1xi32> to vector<2x33xi32>
    %33 = vector.broadcast %1 : vector<1x33xi32> to vector<2x33xi32>
    %34 = arith.cmpi eq, %32, %33 : vector<2x33xi32>
    %35 = arith.extui %34 : vector<2x33xi1> to vector<2x33xi32>
    %36 = arith.sitofp %35 : vector<2x33xi32> to vector<2x33xf32>
    %37 = arith.addf %30, %36 : vector<2x33xf32>
    %38 = vector.extract_strided_slice %0 {offsets = [0, 5], sizes = [2, 1], strides = [1, 1]} : vector<2x8xi32> to vector<2x1xi32>
    %39 = vector.broadcast %38 : vector<2x1xi32> to vector<2x33xi32>
    %40 = vector.broadcast %1 : vector<1x33xi32> to vector<2x33xi32>
    %41 = arith.cmpi eq, %39, %40 : vector<2x33xi32>
    %42 = arith.extui %41 : vector<2x33xi1> to vector<2x33xi32>
    %43 = arith.sitofp %42 : vector<2x33xi32> to vector<2x33xf32>
    %44 = arith.addf %37, %43 : vector<2x33xf32>
    %45 = vector.extract_strided_slice %0 {offsets = [0, 6], sizes = [2, 1], strides = [1, 1]} : vector<2x8xi32> to vector<2x1xi32>
    %46 = vector.broadcast %45 : vector<2x1xi32> to vector<2x33xi32>
    %47 = vector.broadcast %1 : vector<1x33xi32> to vector<2x33xi32>
    %48 = arith.cmpi eq, %46, %47 : vector<2x33xi32>
    %49 = arith.extui %48 : vector<2x33xi1> to vector<2x33xi32>
    %50 = arith.sitofp %49 : vector<2x33xi32> to vector<2x33xf32>
    %51 = arith.addf %44, %50 : vector<2x33xf32>
    %52 = vector.extract_strided_slice %0 {offsets = [0, 7], sizes = [2, 1], strides = [1, 1]} : vector<2x8xi32> to vector<2x1xi32>
    %53 = vector.broadcast %52 : vector<2x1xi32> to vector<2x33xi32>
    %54 = vector.broadcast %1 : vector<1x33xi32> to vector<2x33xi32>
    %55 = arith.cmpi eq, %53, %54 : vector<2x33xi32>
    %56 = arith.extui %55 : vector<2x33xi1> to vector<2x33xi32>
    %57 = arith.sitofp %56 : vector<2x33xi32> to vector<2x33xf32>
    %58 = arith.addf %51, %57 : vector<2x33xf32>
    %59 = arith.truncf %58 : vector<2x33xf32> to vector<2x33xbf16>
    %c0_1 = arith.constant 0 : index
    %c0_2 = arith.constant 0 : index
    %60 = vector.load %arg2[%c0_1, %c0_2] : memref<33x256xbf16, #tpu.memory_space<vmem>>, vector<33x256xbf16>
    %cst_3 = arith.constant dense<0.000000e+00> : vector<2x256xf32>
    %61 = tpu.matmul %59, %60, %cst_3 {dimension_numbers = #tpu.dot_dimension_numbers<[1], [0], [0], [1], [0, 0, 1, 1], [], []>} : vector<2x33xbf16>, vector<33x256xbf16>, vector<2x256xf32> -> vector<2x256xf32>
    %c0_4 = arith.constant 0 : index
    %c0_5 = arith.constant 0 : index
    %62 = vector.load %arg3[%c0_4, %c0_5] : memref<1x256xf32, #tpu.memory_space<vmem>>, vector<1x256xf32>
    %63 = vector.broadcast %62 : vector<1x256xf32> to vector<2x256xf32>
    %64 = arith.addf %61, %63 : vector<2x256xf32>
    %65 = arith.truncf %64 : vector<2x256xf32> to vector<2x256xbf16>
    %cst_6 = arith.constant 0.000000e+00 : bf16
    %66 = vector.broadcast %cst_6 : bf16 to vector<2x256xbf16>
    %67 = arith.maximumf %65, %66 : vector<2x256xbf16>
    %68 = math.tanh %67 : vector<2x256xbf16>
    %c0_7 = arith.constant 0 : index
    %c0_8 = arith.constant 0 : index
    %69 = vector.load %arg4[%c0_7, %c0_8] : memref<256x64xbf16, #tpu.memory_space<vmem>>, vector<256x64xbf16>
    %cst_9 = arith.constant dense<0.000000e+00> : vector<2x64xf32>
    %70 = tpu.matmul %68, %69, %cst_9 {dimension_numbers = #tpu.dot_dimension_numbers<[1], [0], [0], [1], [0, 0, 1, 1], [], []>} : vector<2x256xbf16>, vector<256x64xbf16>, vector<2x64xf32> -> vector<2x64xf32>
    %c0_10 = arith.constant 0 : index
    %c0_11 = arith.constant 0 : index
    %71 = vector.load %arg5[%c0_10, %c0_11] : memref<1x64xf32, #tpu.memory_space<vmem>>, vector<1x64xf32>
    %72 = vector.broadcast %71 : vector<1x64xf32> to vector<2x64xf32>
    %73 = arith.addf %70, %72 : vector<2x64xf32>
    %74 = arith.truncf %73 : vector<2x64xf32> to vector<2x64xbf16>
    %75 = math.tanh %74 : vector<2x64xbf16>
    %cst_12 = arith.constant 0.000000e+00 : bf16
    %76 = vector.broadcast %cst_12 : bf16 to vector<2x64xbf16>
    %77 = arith.maximumf %75, %76 : vector<2x64xbf16>
    %c0_13 = arith.constant 0 : index
    %c0_14 = arith.constant 0 : index
    %78 = vector.load %arg6[%c0_13, %c0_14] : memref<64x128xbf16, #tpu.memory_space<vmem>>, vector<64x128xbf16>
    %cst_15 = arith.constant dense<0.000000e+00> : vector<2x128xf32>
    %79 = tpu.matmul %77, %78, %cst_15 {dimension_numbers = #tpu.dot_dimension_numbers<[1], [0], [0], [1], [0, 0, 1, 1], [], []>} : vector<2x64xbf16>, vector<64x128xbf16>, vector<2x128xf32> -> vector<2x128xf32>
    %c0_16 = arith.constant 0 : index
    %c0_17 = arith.constant 0 : index
    %80 = vector.load %arg7[%c0_16, %c0_17] : memref<1x128xf32, #tpu.memory_space<vmem>>, vector<1x128xf32>
    %81 = vector.broadcast %80 : vector<1x128xf32> to vector<2x128xf32>
    %82 = arith.addf %79, %81 : vector<2x128xf32>
    %83 = arith.truncf %82 : vector<2x128xf32> to vector<2x128xbf16>
    %c0_18 = arith.constant 0 : index
    %c0_19 = arith.constant 0 : index
    %84 = vector.load %arg8[%c0_18, %c0_19] : memref<2x128xbf16, #tpu.memory_space<vmem>>, vector<2x128xbf16>
    tpu.vector_store %arg8[%c0_18, %c0_19], %83 {strides = array<i32>} : memref<2x128xbf16, #tpu.memory_space<vmem>>, vector<2x128xbf16>,
    return
  }
  func.func @transform_0(%arg0: i32) -> (i32, i32) {
    %c0_i32 = arith.constant 0 : i32
    %c0_i32_0 = arith.constant 0 : i32
    return %arg0, %c0_i32 : i32, i32
  }
  func.func @transform_1(%arg0: i32) -> (i32, i32) {
    %c0_i32 = arith.constant 0 : i32
    %c0_i32_0 = arith.constant 0 : i32
    %c0_i32_1 = arith.constant 0 : i32
    return %c0_i32, %c0_i32_0 : i32, i32
  }
  func.func @transform_2(%arg0: i32) -> (i32, i32) {
    %c0_i32 = arith.constant 0 : i32
    %c0_i32_0 = arith.constant 0 : i32
    %c0_i32_1 = arith.constant 0 : i32
    return %c0_i32, %c0_i32_0 : i32, i32
  }
  func.func @transform_3(%arg0: i32) -> (i32, i32) {
    %c0_i32 = arith.constant 0 : i32
    %c0_i32_0 = arith.constant 0 : i32
    %c0_i32_1 = arith.constant 0 : i32
    return %c0_i32, %c0_i32_0 : i32, i32
  }
  func.func @transform_4(%arg0: i32) -> (i32, i32) {
    %c0_i32 = arith.constant 0 : i32
    %c0_i32_0 = arith.constant 0 : i32
    %c0_i32_1 = arith.constant 0 : i32
    return %c0_i32, %c0_i32_0 : i32, i32
  }
  func.func @transform_5(%arg0: i32) -> (i32, i32) {
    %c0_i32 = arith.constant 0 : i32
    %c0_i32_0 = arith.constant 0 : i32
    %c0_i32_1 = arith.constant 0 : i32
    return %c0_i32, %c0_i32_0 : i32, i32
  }
  func.func @transform_6(%arg0: i32) -> (i32, i32) {
    %c0_i32 = arith.constant 0 : i32
    %c0_i32_0 = arith.constant 0 : i32
    %c0_i32_1 = arith.constant 0 : i32
    return %c0_i32, %c0_i32_0 : i32, i32
  }
  func.func @transform_7(%arg0: i32) -> (i32, i32) {
    %c0_i32 = arith.constant 0 : i32
    %c0_i32_0 = arith.constant 0 : i32
    return %arg0, %c0_i32 : i32, i32
  }
}

</mosaic_0001>

<bundles_post_ra>
// kernel: tpu_custom_call.1
= control target key start
LH: loop header
LB: loop body
LE: loop exit
PB: predicated region body
PF: predicated region fallthrough
CT: control target
= control target key end

     0   :  { %v596_v1 = vmov 0   ;;  %v597_v2 = vmov 2   ;;  %s748_s0 = inlined_call_operand.vmem [shape: s32[2,8], index: 0, kind: input, shape index: {}]   ;;  %s749_s1 = inlined_call_operand.vmem [shape: bf16[33,256], index: 1, kind: input, shape index: {}]   ;;  %s750_s2 = inlined_call_operand.vmem [shape: f32[1,256], index: 2, kind: input, shape index: {}]   ;;  %s751_s3 = inlined_call_operand.vmem [shape: bf16[256,64], index: 3, kind: input, shape index: {}]   ;;  %s752_s4 = inlined_call_operand.vmem [shape: f32[1,64], index: 4, kind: input, shape index: {}]   ;;  %s753_s5 = inlined_call_operand.vmem [shape: bf16[64,128], index: 5, kind: input, shape index: {}]   ;;  %s754_s6 = inlined_call_operand.vmem [shape: f32[1,128], index: 6, kind: input, shape index: {}]   ;;  %s755_s7 = inlined_call_operand.hbm [shape: bf16[2,128], index: 7, kind: output, shape index: {}]  }
   0x1   :  { %v28_v0 = vld [vmem:[%s748_s0] sm:$0x3]  ;;  %553 = vset.pattern.permute.xlu0 %v596_v1  ;;  %555 = vset.pattern.permute.xlu1 %v597_v2 }
   0x2   :  { %32 = vperm.xlu0 %553, %v28_v0   ;;  %46 = vperm.xlu1 %555, %v28_v0  }
   0x3   :  { %12 = vsyncpa [#allocation3], 0  ;;  %v598_v3 = vmov 4   ;;  %v599_v4 = vmov 1   ;;  %v600_v5 = vmov 3   ;;  %v601_v6 = vmov 5  }
   0x4   :  { %557 = vset.pattern.permute.xlu2 %v598_v3  ;;  %v602_v7 = vmov 6   ;;  %v603_v8 = vmov 7   ;;  %v92_v9 = vld [vmem:[%s749_s1 + $0x20] sm:$0x11]  ;;  %vm128_vm0 = vcmask 1040384   ;;  %v530_v30 = vld [vmem:[%s751_s3 + $0x38] sm:$0xff]  ;;  %v29_v34 = vlaneseq }
   0x5   :  { %60 = vperm.xlu2 %557, %v28_v0   ;;  %v112_v10 = vunpack.c.l.b16 %v92_v9  ;;  %v113_v11 = vunpack.c.h.b16 %v92_v9  ;;  %v130_v14 = vsel %vm128_vm0, 65535, %v596_v1  ;;  %v430_v17 = vld [vmem:[%s749_s1 + $0x10] sm:$0xf]  ;;  %v522_v18 = vld [vmem:[%s749_s1 + $0x14] sm:$0xf0]  ;;  %308 = vmatpush.bf16.msra.mxu2 %v530_v30  ;;  %v528_v37 = vld [vmem:[%s751_s3 + $0x28] sm:$0xff] }
   0x6   :  { %v521_v19 = vld [vmem:[%s749_s1 + $0x14] sm:$0xf]  ;;  %v431_v20 = vor.u32 %v522_v18, %v430_v17  ;;  %v432_v21 = vld [vmem:[%s749_s1 + $0x18] sm:$0xf0]  ;;  %v422_v23 = vld [vmem:[%s749_s1] sm:$0xf] }
   0x7   :  { %v118_v12 = vpack.c.b16 %v112_v10, %v112_v10  ;;  %v119_v13 = vpack.c.b16 %v113_v11, %v113_v11  ;;  %v435_v22 = vor.u32 %v521_v19, %v432_v21  ;;  %v520_v24 = vld [vmem:[%s749_s1 + $0x4] sm:$0xf0]  ;;  %v519_v25 = vld [vmem:[%s749_s1 + $0x4] sm:$0xf]  ;;  %v424_v27 = vld [vmem:[%s749_s1 + $0x8] sm:$0xf0] }
   0x8   :  { %v423_v26 = vor.u32 %v520_v24, %v422_v23  ;;  %v427_v28 = vor.u32 %v519_v25, %v424_v27  ;;  %v538_v31 = vld [vmem:[%s751_s3 + $0x78] sm:$0xff]  ;;  %v529_v32 = vld [vmem:[%s751_s3 + $0x30] sm:$0xff]  ;;  %v536_v38 = vld [vmem:[%s751_s3 + $0x68] sm:$0xff]  ;;  %v30_v39 = vand.u32 127, %v29_v34  ;;  %v604_v45 = vmov 0.0   ;;  %s403_s16 = sshll.u32 %s755_s7, 4  ;;  %s404_s16 = int_to_ptr.hbm [resolvable:$true] %s403_s16 }
   0x9   :  { %v132_v15 = vand.u32 %v130_v14, %v118_v12  ;;  %v135_v16 = vand.u32 %v130_v14, %v119_v13  ;;  %321 = vmatpush.bf16.msra.mxu3 %v538_v31  ;;  %v537_v33 = vld [vmem:[%s751_s3 + $0x70] sm:$0xff]  ;;  %309 = vmatpush.bf16.msra.mxu2 %v529_v32  ;;  %v527_v41 = vld [vmem:[%s751_s3 + $0x20] sm:$0xff]  ;;  %vm124_vm9 = vcmask 269312   ;;  %v534_v1 = vld [vmem:[%s751_s3 + $0x58] sm:$0xff]  ;;  %vm377_vm10 = vcmask 523264  }
   0xa   :  { %554 = vset.pattern.permute.xlu0 %v599_v4  ;;  %556 = vset.pattern.permute.xlu1 %v600_v5  ;;  %v535_v42 = vld [vmem:[%s751_s3 + $0x60] sm:$0xff]  ;;  %v525_v2 = vld [vmem:[%s751_s3 + $0x10] sm:$0xff]  ;;  %v524_v4 = vld [vmem:[%s751_s3 + $0x8] sm:$0xff] }
   0xb   :  { %39 = vperm.xlu0 %554, %v28_v0   ;;  %53 = vperm.xlu1 %556, %v28_v0   ;;  %v533_v3 = vld [vmem:[%s751_s3 + $0x50] sm:$0xff]  ;;  %v532_v5 = vld [vmem:[%s751_s3 + $0x48] sm:$0xff]  ;;  %v542_v27 = vld [vmem:[%s753_s5 + $0x18] sm:$0xff] }
   0xc   :  { %142 = vmatpush.bf16.msra.mxu0 %v132_v15  ;;  %155 = vmatpush.bf16.msra.mxu1 %v135_v16  ;;  %v539_v30 = vld [vmem:[%s753_s5] sm:$0xff] }
   0xd   :  { %558 = vset.pattern.permute.xlu2 %v601_v6  ;;  %322 = vmatpush.bf16.msra.mxu3 %v537_v33  ;;  %v523_v6 = vld [vmem:[%s751_s3] sm:$0xff] }
   0xe   :  { %67 = vperm.xlu2 %558, %v28_v0   ;;  %310 = vmatpush.bf16.msra.mxu2 %v528_v37  ;;  %v562_v31 = vld [vmem:[%s752_s4] ss:$0 sm:$0xff]  ;;  %s605_s4 = smov [#allocation2]  }
   0xf   :  { %s401_s13 = sshll.u32 %s605_s4, 4  ;;  %s402_s13 = int_to_ptr.vmem [resolvable:$true] %s401_s13 }
  0x10   :  { %143 = vmatpush.bf16.msra.mxu0 %v431_v20  ;;  %156 = vmatpush.bf16.msra.mxu1 %v435_v22 }
  0x11   :  { %323 = vmatpush.bf16.msra.mxu3 %v536_v38 }
  0x12   :  { %311 = vmatpush.bf16.msra.mxu2 %v527_v41 }
  0x13   :  { %559 = vset.pattern.permute.xlu1 %v602_v7  ;;  %561 = vset.pattern.permute.xlu0 %v603_v8  ;;  %v531_v7 = vld [vmem:[%s751_s3 + $0x40] sm:$0xff] }
  0x14   :  { %74 = vperm.xlu1 %559, %v28_v0   ;;  %144 = vmatpush.bf16.msra.mxu0 %v423_v26 }
  0x15   :  { %157 = vmatpush.bf16.msra.mxu1 %v427_v28  ;;  %324 = vmatpush.bf16.msra.mxu3 %v535_v42  ;;  %v541_v28 = vld [vmem:[%s753_s5 + $0x10] sm:$0xff] }
  0x16   :  { %560 = vset.pattern.permute.xlu2 %v603_v8  ;;  %v93_v8 = vld [vmem:[%s750_s2] sm:$0x3] }
  0x17   :  { %81 = vperm.xlu2 %560, %v28_v0   ;;  %v526_v0 = vld [vmem:[%s751_s3 + $0x18] sm:$0xff]  ;;  %v95_v9 = vperm.slane %v93_v8, 0  ;;  %v96_v10 = vperm.slane %v93_v8, 1 }
  0x18   :  { %312 = vmatpush.bf16.msra.mxu2 %v526_v0  ;;  %385 = vmatpush.bf16.msrb.mxu0 %v542_v27 }
  0x19   :  { %325 = vmatpush.bf16.msra.mxu3 %v534_v1 }
  0x1c   :  { %313 = vmatpush.bf16.msra.mxu2 %v525_v2  ;;  %386 = vmatpush.bf16.msrb.mxu0 %v541_v28 }
  0x1d   :  { %326 = vmatpush.bf16.msra.mxu3 %v533_v3 }
  0x20   :  { %314 = vmatpush.bf16.msra.mxu2 %v524_v4 }
  0x21   :  { %327 = vmatpush.bf16.msra.mxu3 %v532_v5 }
  0x24   :  { %315 = vmatpush.bf16.msra.mxu2 %v523_v6 }
  0x25   :  { %328 = vmatpush.bf16.msra.mxu3 %v531_v7 }
  0x5f   :  { %v61_v29 = vpop.permute.xlu2 %60 }
  0x60   :  { %vm62_vm5 = vcmp.eq.s32.totalorder %v61_v29, %v30_v39  ;;  %v540_v29 = vld [vmem:[%s753_s5 + $0x8] sm:$0xff] }
  0x61   :  { %v416_v54 = vsel %vm62_vm5, 1.0, %v604_v45  ;;  %387 = vmatpush.bf16.msrb.mxu0 %v540_v29 }
  0x65   :  { %388 = vmatpush.bf16.msrb.mxu0 %v539_v30 }
  0x68   :  { %v68_v40 = vpop.permute.xlu2 %67 }
  0x69   :  { %vm69_vm6 = vcmp.eq.s32.totalorder %v68_v40, %v30_v39 }
  0x6a   :  { %v417_v57 = vsel %vm69_vm6, 1.0, %v604_v45 }
  0x71   :  { %v82_v52 = vpop.permute.xlu2 %81 }
  0x72   :  { %vm83_vm7 = vcmp.eq.s32.totalorder %v82_v52, %v30_v39 }
  0x73   :  { %v419_v60 = vsel %vm83_vm7, 1.0, %v604_v45 }
  0x74   :  { %v33_v35 = vpop.permute.xlu0 %32  ;;  %v47_v36 = vpop.permute.xlu1 %46 }
  0x75   :  { %vm34_vm1 = vcmp.eq.s32.totalorder %v33_v35, %v30_v39  ;;  %vm48_vm2 = vcmp.eq.s32.totalorder %v47_v36, %v30_v39 }
  0x76   :  { %v412_v46 = vsel %vm34_vm1, 1.0, %v604_v45  ;;  %v414_v49 = vsel %vm48_vm2, 1.0, %v604_v45 }
  0x7d   :  { %v40_v43 = vpop.permute.xlu0 %39  ;;  %v54_v44 = vpop.permute.xlu1 %53 }
  0x7e   :  { %vm41_vm3 = vcmp.eq.s32.totalorder %v40_v43, %v30_v39  ;;  %vm55_vm4 = vcmp.eq.s32.totalorder %v54_v44, %v30_v39  ;;  %v563_v43 = vld [vmem:[%s754_s6] ss:$0 sm:$0xff] }
  0x7f   :  { %v413_v47 = vsel %vm41_vm3, 1.0, %v604_v45  ;;  %v415_v51 = vsel %vm55_vm4, 1.0, %v604_v45 }
  0x80   :  { %v44_v48 = vadd.f32 %v413_v47, %v412_v46 }
  0x82   :  { %v51_v50 = vadd.f32 %v414_v49, %v44_v48 }
  0x84   :  { %v58_v53 = vadd.f32 %v415_v51, %v51_v50 }
  0x86   :  { %v65_v55 = vadd.f32 %v416_v54, %v58_v53  ;;  %v75_v56 = vpop.permute.xlu1 %74 }
  0x87   :  { %vm76_vm8 = vcmp.eq.s32.totalorder %v75_v56, %v30_v39 }
  0x88   :  { %v72_v58 = vadd.f32 %v417_v57, %v65_v55  ;;  %v418_v59 = vsel %vm76_vm8, 1.0, %v604_v45 }
  0x8a   :  { %v79_v61 = vadd.f32 %v418_v59, %v72_v58 }
  0x8c   :  { %v86_v62 = vadd.f32 %v419_v60, %v79_v61 }
  0x8e   :  { %v87_v63 = vpack.c.bf16 %v86_v62, %v86_v62 }
  0x90   :  { %436 = vmatmul.msk.bf16.vlgmr.msra.gmra.mxu0 %vm124_vm9, %v87_v63  ;;  %437 = vmatmul.msk.bf16.vlgmr.msra.gmra.mxu1 %vm124_vm9, %v87_v63 }
 0x10d   :  { %v146_v11 = vpop.f32.mrf.mxu0  ;;  %v159_v12 = vpop.f32.mrf.mxu1 }
 0x10e   :  { %v147_v13 = vadd.f32 %v146_v11, %v95_v9  ;;  %v160_v14 = vadd.f32 %v159_v12, %v96_v10 }
 0x110   :  { %v166_v15 = vmax.f32 %v147_v13, 0.0  ;;  %v167_v16 = vmax.f32 %v160_v14, 0.0 }
 0x112   :  { %v168_v17 = vpack.c.bf16 %v166_v15, %v166_v15  ;;  %v169_v18 = vpack.c.bf16 %v167_v16, %v167_v16 }
 0x114   :  { %v170_v19 = vunpack.c.l.bf16 %v168_v17  ;;  %v171_v20 = vunpack.c.l.bf16 %v169_v18 }
 0x115   :  { %v148_v21 = vpop.f32.mrf.mxu0  ;;  %v161_v22 = vpop.f32.mrf.mxu1 }
 0x116   :  { %564 = vtanh.f32 %v170_v19 }
 0x117   :  { %566 = vtanh.f32 %v171_v20 }
 0x11c   :  { %v565_v23 = vpop.eup %564 }
 0x11d   :  { %v567_v24 = vpop.eup %566  ;;  %v174_v25 = vpack.c.bf16 %v565_v23, %v565_v23 }
 0x11e   :  { %v175_v26 = vpack.c.bf16 %v567_v24, %v567_v24 }
 0x11f   :  { %316 = vmatmul.bf16.vlgmr.msra.gmra.mxu2 %v174_v25 }
 0x120   :  { %329 = vmatmul.bf16.vlgmr.msra.gmra.mxu3 %v175_v26 }
 0x1a2   :  { %v317_v32 = vpop.f32.mrf.mxu2 }
 0x1a3   :  { %v318_v33 = vadd.f32 %v562_v31, %v317_v32  ;;  %v330_v34 = vpop.f32.mrf.mxu3 }
 0x1a5   :  { %v331_v35 = vadd.f32 %v330_v34, %v318_v33 }
 0x1a7   :  { %v334_v36 = vpack.c.bf16 %v331_v35, %v331_v35 }
 0x1a9   :  { %v335_v37 = vunpack.c.l.bf16 %v334_v36 }
 0x1aa   :  { %v319_v38 = vpop.f32.mrf.mxu2 }
 0x1ab   :  { %568 = vtanh.f32 %v335_v37  ;;  %v332_v39 = vpop.f32.mrf.mxu3 }
 0x1b1   :  { %v569_v40 = vpop.eup %568 }
 0x1b2   :  { %v339_v41 = vmax.f32 %v569_v40, 0.0 }
 0x1b4   :  { %v340_v42 = vpack.c.bf16 %v339_v41, %v339_v41 }
 0x1b6   :  { %518 = vmatmul.msk.bf16.vlgmr.msrb.gmra.mxu0 %vm377_vm10, %v340_v42 }
 0x233   :  { %v390_v44 = vpop.f32.mrf.mxu0 }
 0x234   :  { %v391_v45 = vadd.f32 %v563_v43, %v390_v44 }
 0x236   :  { %v394_v46 = vpack.c.bf16 %v391_v45, %v391_v45 }
 0x238   :  { %395 = vst [vmem:[#allocation2] sm:$0x1] %v394_v46 }
 0x239   :  { %406 = dma.vmem_to_hbm [thread:$0]  %s402_s13, 16, %s404_s16, [#allocation3]  }
 0x23b   :  { %v392_v47 = vpop.f32.mrf.mxu0 }
 0x23c   :  { %594 = dma.done.wait [#allocation3], 16  }
 0x23d   :  { %595 = vsyncadd [#allocation3], 4294967280 }
 0x23e   :  { %411 = vsyncpa [#allocation3], 1 }

</bundles_post_ra>
